<compile_context>
chip_gen: v6e
topology: v6e:2x2x1
jax: 0.10.0
libtpu: 0.0.40
codegen_flags: <defaults>
</compile_context>

<pallas_src>
import functools

import jax
import jax.numpy as jnp
from jax.experimental import pallas as pl
from jax.experimental.pallas import tpu as pltpu


def _mlp_edge_kernel(src_ref, dst_ref, ht_ref, w1s_ref, w1d_ref, b1_ref,
                     w2_ref, b2_ref, o_ref, *, project_nodes_first):
    # src_ref/dst_ref: (1, TILE_E) int32 edge endpoint ids
    # ht_ref:          (D, N)  node features, transposed, VMEM-resident
    # w1s_ref/w1d_ref: (H, D)  torch W1.weight split: [:, :D] and [:, D:]
    # b1_ref:          (H, 1)  bias column
    # w2_ref:          (H, 1)  torch W2.weight transposed
    # b2_ref:          (1, 1)  scalar bias in SMEM
    # o_ref:           (1, TILE_E) lane-dense scores
    n_nodes = ht_ref.shape[1]
    tile_e = o_ref.shape[1]

    # One-hot gather matrices (N, TILE_E), built on the VPU from the index tile.
    node_ids = jax.lax.broadcasted_iota(jnp.int32, (n_nodes, tile_e), 0)
    onehot_src = (node_ids == src_ref[...]).astype(jnp.float32)
    onehot_dst = (node_ids == dst_ref[...]).astype(jnp.float32)

    if project_nodes_first:
        # Project the (small) node table once per step, then gather projected
        # columns: (H,D)@(D,N) -> (H,N); (H,N)@(N,TILE_E) -> (H,TILE_E).
        ps = jnp.dot(w1s_ref[...], ht_ref[...], preferred_element_type=jnp.float32)
        pd = jnp.dot(w1d_ref[...], ht_ref[...], preferred_element_type=jnp.float32)
        hidden = (jnp.dot(ps, onehot_src, preferred_element_type=jnp.float32)
                  + jnp.dot(pd, onehot_dst, preferred_element_type=jnp.float32))
    else:
        # Gather endpoint features, then apply W1 per edge tile.
        xs = jnp.dot(ht_ref[...], onehot_src, preferred_element_type=jnp.float32)
        xd = jnp.dot(ht_ref[...], onehot_dst, preferred_element_type=jnp.float32)
        hidden = (jnp.dot(w1s_ref[...], xs, preferred_element_type=jnp.float32)
                  + jnp.dot(w1d_ref[...], xd, preferred_element_type=jnp.float32))

    # Bias + ReLU on the VPU.  (H, TILE_E)
    hidden = jnp.maximum(hidden + b1_ref[...], 0.0)

    # Second layer as VPU multiply + XLU sublane reduction (no skinny matmul).
    score = jnp.sum(hidden * w2_ref[...], axis=0, keepdims=True)   # (1, TILE_E)
    o_ref[...] = (score + b2_ref[0, 0]).astype(o_ref.dtype)


def mlp_predictor_scores(src, dst, h, w1, b1, w2, b2, *, tile_e=512):
    """Per-edge scores of MLPPredictor.

    src, dst : [E] int32   edge endpoints
    h        : [N, D] f32  node features
    w1       : [H, 2D] f32 (torch W1.weight layout)
    b1       : [H] f32
    w2       : [1, H] f32  (torch W2.weight layout)
    b2       : [1] f32
    returns  : [E] f32
    """
    n_nodes, feat = h.shape
    hid_size = w1.shape[0]
    num_edges = src.shape[0]
    assert w1.shape[1] == 2 * feat

    # Lane-axis edge tile: multiple of 128; don't over-pad a tiny edge set.
    tile_e = max(128, (int(tile_e) // 128) * 128)
    tile_e = min(tile_e, max(128, pl.cdiv(num_edges, 128) * 128))
    e_pad = pl.cdiv(num_edges, tile_e) * tile_e
    grid = (e_pad // tile_e,)

    # Static dataflow choice: per-step MACs of each variant (per src/dst half).
    proj_macs = hid_size * feat * n_nodes + hid_size * n_nodes * tile_e
    gather_macs = feat * n_nodes * tile_e + hid_size * feat * tile_e
    project_nodes_first = proj_macs <= gather_macs

    # Layout-only glue (no gathered / concatenated edge features hit HBM).
    src2d = jnp.pad(src.astype(jnp.int32).reshape(1, num_edges),
                    ((0, 0), (0, e_pad - num_edges)))
    dst2d = jnp.pad(dst.astype(jnp.int32).reshape(1, num_edges),
                    ((0, 0), (0, e_pad - num_edges)))
    ht = h.T                        # (D, N): edges-on-lanes formulation
    w1_src = w1[:, :feat]           # (H, D)
    w1_dst = w1[:, feat:]           # (H, D)
    b1_col = b1.reshape(hid_size, 1)
    w2_col = w2.reshape(hid_size, 1)
    b2_2d = b2.reshape(1, 1)

    # VMEM budget: double-buffered per-step blocks + grid-invariant operands +
    # in-kernel temporaries (superset of both dataflow variants), with 2x
    # slack.  Floor 32 MiB (above v5e's 16 MiB default), cap 48 MiB (below
    # v7x's 64 MiB physical).
    step_bytes = 2 * 4 * (3 * tile_e)                                   # src/dst/out tiles
    resident_bytes = 4 * (feat * n_nodes + 2 * hid_size * feat + 2 * hid_size)
    temp_bytes = 4 * (2 * n_nodes * tile_e          # one-hot gathers
                      + hid_size * tile_e           # hidden
                      + 2 * feat * tile_e           # xs/xd (gather-first)
                      + 2 * hid_size * n_nodes)     # ps/pd (project-first)
    vmem_limit = int(min(max(2 * (step_bytes + resident_bytes + temp_bytes),
                             32 * 1024 * 1024), 48 * 1024 * 1024))

    kernel = functools.partial(_mlp_edge_kernel,
                               project_nodes_first=project_nodes_first)

    out = pl.pallas_call(
        kernel,
        out_shape=jax.ShapeDtypeStruct((1, e_pad), jnp.float32),
        grid_spec=pltpu.PrefetchScalarGridSpec(
            num_scalar_prefetch=0,
            grid=grid,
            in_specs=[
                pl.BlockSpec((1, tile_e), lambda i: (0, i)),         # src ids
                pl.BlockSpec((1, tile_e), lambda i: (0, i)),         # dst ids
                pl.BlockSpec((feat, n_nodes), lambda i: (0, 0)),     # h^T (resident)
                pl.BlockSpec((hid_size, feat), lambda i: (0, 0)),    # W1 src half
                pl.BlockSpec((hid_size, feat), lambda i: (0, 0)),    # W1 dst half
                pl.BlockSpec((hid_size, 1), lambda i: (0, 0)),       # b1 column
                pl.BlockSpec((hid_size, 1), lambda i: (0, 0)),       # w2 column
                pl.BlockSpec(memory_space=pltpu.MemorySpace.SMEM),   # b2 scalar
            ],
            out_specs=pl.BlockSpec((1, tile_e), lambda i: (0, i)),   # lane-dense
        ),
        compiler_params=pltpu.CompilerParams(
            dimension_semantics=("parallel",),
            vmem_limit_bytes=vmem_limit),
    )(src2d, dst2d, ht, w1_src, w1_dst, b1_col, w2_col, b2_2d)

    return out[0, :num_edges]


def _reference(src, dst, h, w1, b1, w2, b2):
    # Mirrors the PyTorch module exactly (nn.Linear: x @ W^T + b).
    x = jnp.concatenate([h[src], h[dst]], axis=1)
    hid = jnp.maximum(x @ w1.T + b1, 0.0)
    return (hid @ w2.T + b2).squeeze(1)


if __name__ == "__main__":
    key = jax.random.PRNGKey(0)

    # Small synthetic "graph": N nodes with feature dim D, E edges.
    N, D = 64, 32
    input_size = 2 * D           # MLPPredictor input_size (concat of src/dst)
    hidden_size = 32
    E = 1000                     # not a tile multiple -> exercises padding; grid=2

    k_h, k_src, k_dst, k_w1, k_b1, k_w2, k_b2 = jax.random.split(key, 7)

    h = jax.random.normal(k_h, (N, D), dtype=jnp.float32)
    src = jax.random.randint(k_src, (E,), 0, N, dtype=jnp.int32)
    dst = jax.random.randint(k_dst, (E,), 0, N, dtype=jnp.int32)

    # Parameters in native torch nn.Linear layouts:
    # W1.weight: [hidden, input_size], W2.weight: [1, hidden]
    w1 = jax.random.normal(k_w1, (hidden_size, input_size), jnp.float32) * 0.1
    b1 = jax.random.normal(k_b1, (hidden_size,), jnp.float32) * 0.1
    w2 = jax.random.normal(k_w2, (1, hidden_size), jnp.float32) * 0.1
    b2 = jax.random.normal(k_b2, (1,), jnp.float32) * 0.1

    scores = mlp_predictor_scores(src, dst, h, w1, b1, w2, b2, tile_e=512)
    scores = jax.block_until_ready(scores)

    ref = _reference(src, dst, h, w1, b1, w2, b2)
    assert scores.shape == (E,)
    # f32 MXU multi-pass accumulation differs slightly from XLA's f32 dot path,
    # so allow 1e-4 (a real bug would be O(0.1)).
    err = float(jnp.max(jnp.abs(scores - ref)))
    assert err < 1e-4, f"max abs err {err}"

    print("KERNEL_OK")
</pallas_src>

<mosaic_0001>
module attributes {stable_mosaic.version = 11 : i64} {
  func.func @_mlp_edge_kernel(%arg0: i32, %arg1: memref<1x512xi32, #tpu.memory_space<vmem>>, %arg2: memref<1x512xi32, #tpu.memory_space<vmem>>, %arg3: memref<32x64xf32, #tpu.memory_space<vmem>>, %arg4: memref<32x32xf32, #tpu.memory_space<vmem>>, %arg5: memref<32x32xf32, #tpu.memory_space<vmem>>, %arg6: memref<32x1xf32, #tpu.memory_space<vmem>>, %arg7: memref<32x1xf32, #tpu.memory_space<vmem>>, %arg8: memref<1x1xf32, #tpu.memory_space<smem>>, %arg9: memref<1x512xf32, #tpu.memory_space<vmem>>) attributes {dimension_semantics = [#tpu.dimension_semantics<parallel>], iteration_bounds = array<i64: 2>, scalar_prefetch = 0 : i64, scratch_operands = 0 : i64, tpu.core_type = #tpu.core_type<tc>, window_params = [{transform_indices = @transform_0, window_bounds = array<i64: 1, 512>}, {transform_indices = @transform_1, window_bounds = array<i64: 1, 512>}, {pipeline_mode = #tpu.pipeline_mode<synchronous>, transform_indices = @transform_2, window_bounds = array<i64: 32, 64>}, {pipeline_mode = #tpu.pipeline_mode<synchronous>, transform_indices = @transform_3, window_bounds = array<i64: 32, 32>}, {pipeline_mode = #tpu.pipeline_mode<synchronous>, transform_indices = @transform_4, window_bounds = array<i64: 32, 32>}, {pipeline_mode = #tpu.pipeline_mode<synchronous>, transform_indices = @transform_5, window_bounds = array<i64: 32, 1>}, {pipeline_mode = #tpu.pipeline_mode<synchronous>, transform_indices = @transform_6, window_bounds = array<i64: 32, 1>}, {transform_indices = @transform_7, window_bounds = array<i64: 1, 1>}, {transform_indices = @transform_8, window_bounds = array<i64: 1, 512>}]} {
    %0 = tpu.iota {dimensions = array<i32: 0>} : vector<64x512xi32>
    %c0 = arith.constant 0 : index
    %c0_0 = arith.constant 0 : index
    %1 = vector.load %arg1[%c0, %c0_0] : memref<1x512xi32, #tpu.memory_space<vmem>>, vector<1x512xi32>
    %2 = vector.broadcast %1 : vector<1x512xi32> to vector<64x512xi32>
    %3 = arith.cmpi eq, %0, %2 : vector<64x512xi32>
    %4 = arith.extui %3 : vector<64x512xi1> to vector<64x512xi32>
    %5 = arith.sitofp %4 : vector<64x512xi32> to vector<64x512xf32>
    %c0_1 = arith.constant 0 : index
    %c0_2 = arith.constant 0 : index
    %6 = vector.load %arg2[%c0_1, %c0_2] : memref<1x512xi32, #tpu.memory_space<vmem>>, vector<1x512xi32>
    %7 = vector.broadcast %6 : vector<1x512xi32> to vector<64x512xi32>
    %8 = arith.cmpi eq, %0, %7 : vector<64x512xi32>
    %9 = arith.extui %8 : vector<64x512xi1> to vector<64x512xi32>
    %10 = arith.sitofp %9 : vector<64x512xi32> to vector<64x512xf32>
    %c0_3 = arith.constant 0 : index
    %c0_4 = arith.constant 0 : index
    %11 = vector.load %arg4[%c0_3, %c0_4] : memref<32x32xf32, #tpu.memory_space<vmem>>, vector<32x32xf32>
    %c0_5 = arith.constant 0 : index
    %c0_6 = arith.constant 0 : index
    %12 = vector.load %arg3[%c0_5, %c0_6] : memref<32x64xf32, #tpu.memory_space<vmem>>, vector<32x64xf32>
    %cst = arith.constant dense<0.000000e+00> : vector<32x64xf32>
    %13 = tpu.matmul %11, %12, %cst {dimension_numbers = #tpu.dot_dimension_numbers<[1], [0], [0], [1], [0, 0, 1, 1], [], []>} : vector<32x32xf32>, vector<32x64xf32>, vector<32x64xf32> -> vector<32x64xf32>
    %c0_7 = arith.constant 0 : index
    %c0_8 = arith.constant 0 : index
    %14 = vector.load %arg5[%c0_7, %c0_8] : memref<32x32xf32, #tpu.memory_space<vmem>>, vector<32x32xf32>
    %c0_9 = arith.constant 0 : index
    %c0_10 = arith.constant 0 : index
    %15 = vector.load %arg3[%c0_9, %c0_10] : memref<32x64xf32, #tpu.memory_space<vmem>>, vector<32x64xf32>
    %cst_11 = arith.constant dense<0.000000e+00> : vector<32x64xf32>
    %16 = tpu.matmul %14, %15, %cst_11 {dimension_numbers = #tpu.dot_dimension_numbers<[1], [0], [0], [1], [0, 0, 1, 1], [], []>} : vector<32x32xf32>, vector<32x64xf32>, vector<32x64xf32> -> vector<32x64xf32>
    %cst_12 = arith.constant dense<0.000000e+00> : vector<32x512xf32>
    %17 = tpu.matmul %13, %5, %cst_12 {dimension_numbers = #tpu.dot_dimension_numbers<[1], [0], [0], [1], [0, 0, 1, 1], [], []>} : vector<32x64xf32>, vector<64x512xf32>, vector<32x512xf32> -> vector<32x512xf32>
    %cst_13 = arith.constant dense<0.000000e+00> : vector<32x512xf32>
    %18 = tpu.matmul %16, %10, %cst_13 {dimension_numbers = #tpu.dot_dimension_numbers<[1], [0], [0], [1], [0, 0, 1, 1], [], []>} : vector<32x64xf32>, vector<64x512xf32>, vector<32x512xf32> -> vector<32x512xf32>
    %19 = arith.addf %17, %18 : vector<32x512xf32>
    %c0_14 = arith.constant 0 : index
    %c0_15 = arith.constant 0 : index
    %20 = vector.load %arg6[%c0_14, %c0_15] : memref<32x1xf32, #tpu.memory_space<vmem>>, vector<32x1xf32>
    %21 = vector.broadcast %20 : vector<32x1xf32> to vector<32x512xf32>
    %22 = arith.addf %19, %21 : vector<32x512xf32>
    %cst_16 = arith.constant 0.000000e+00 : f32
    %23 = vector.broadcast %cst_16 : f32 to vector<32x512xf32>
    %24 = arith.maximumf %22, %23 : vector<32x512xf32>
    %c0_17 = arith.constant 0 : index
    %c0_18 = arith.constant 0 : index
    %25 = vector.load %arg7[%c0_17, %c0_18] : memref<32x1xf32, #tpu.memory_space<vmem>>, vector<32x1xf32>
    %26 = vector.broadcast %25 : vector<32x1xf32> to vector<32x512xf32>
    %27 = arith.mulf %24, %26 : vector<32x512xf32>
    %cst_19 = arith.constant dense<0.000000e+00> : vector<512xf32>
    %28 = vector.multi_reduction <add>, %27, %cst_19 [0] : vector<32x512xf32> to vector<512xf32>
    %29 = vector.shape_cast %28 : vector<512xf32> to vector<1x512xf32>
    %c0_20 = arith.constant 0 : index
    %c0_21 = arith.constant 0 : index
    %30 = memref.load %arg8[%c0_20, %c0_21] : memref<1x1xf32, #tpu.memory_space<smem>>
    %31 = vector.broadcast %30 : f32 to vector<1x512xf32>
    %32 = arith.addf %29, %31 : vector<1x512xf32>
    %c0_22 = arith.constant 0 : index
    %c0_23 = arith.constant 0 : index
    %33 = vector.load %arg9[%c0_22, %c0_23] : memref<1x512xf32, #tpu.memory_space<vmem>>, vector<1x512xf32>
    tpu.vector_store %arg9[%c0_22, %c0_23], %32 {strides = array<i32>} : memref<1x512xf32, #tpu.memory_space<vmem>>, vector<1x512xf32>,
    return
  }
  func.func @transform_0(%arg0: i32) -> (i32, i32) {
    %c0_i32 = arith.constant 0 : i32
    %c0_i32_0 = arith.constant 0 : i32
    return %c0_i32, %arg0 : i32, i32
  }
  func.func @transform_1(%arg0: i32) -> (i32, i32) {
    %c0_i32 = arith.constant 0 : i32
    %c0_i32_0 = arith.constant 0 : i32
    return %c0_i32, %arg0 : i32, i32
  }
  func.func @transform_2(%arg0: i32) -> (i32, i32) {
    %c0_i32 = arith.constant 0 : i32
    %c0_i32_0 = arith.constant 0 : i32
    %c0_i32_1 = arith.constant 0 : i32
    return %c0_i32, %c0_i32_0 : i32, i32
  }
  func.func @transform_3(%arg0: i32) -> (i32, i32) {
    %c0_i32 = arith.constant 0 : i32
    %c0_i32_0 = arith.constant 0 : i32
    %c0_i32_1 = arith.constant 0 : i32
    return %c0_i32, %c0_i32_0 : i32, i32
  }
  func.func @transform_4(%arg0: i32) -> (i32, i32) {
    %c0_i32 = arith.constant 0 : i32
    %c0_i32_0 = arith.constant 0 : i32
    %c0_i32_1 = arith.constant 0 : i32
    return %c0_i32, %c0_i32_0 : i32, i32
  }
  func.func @transform_5(%arg0: i32) -> (i32, i32) {
    %c0_i32 = arith.constant 0 : i32
    %c0_i32_0 = arith.constant 0 : i32
    %c0_i32_1 = arith.constant 0 : i32
    return %c0_i32, %c0_i32_0 : i32, i32
  }
  func.func @transform_6(%arg0: i32) -> (i32, i32) {
    %c0_i32 = arith.constant 0 : i32
    %c0_i32_0 = arith.constant 0 : i32
    %c0_i32_1 = arith.constant 0 : i32
    return %c0_i32, %c0_i32_0 : i32, i32
  }
  func.func @transform_7(%arg0: i32) -> (i32, i32) {
    %c0_i32 = arith.constant 0 : i32
    %c0_i32_0 = arith.constant 0 : i32
    %c0_i32_1 = arith.constant 0 : i32
    return %c0_i32, %c0_i32_0 : i32, i32
  }
  func.func @transform_8(%arg0: i32) -> (i32, i32) {
    %c0_i32 = arith.constant 0 : i32
    %c0_i32_0 = arith.constant 0 : i32
    return %c0_i32, %arg0 : i32, i32
  }
}

</mosaic_0001>

<bundles_post_ra>
// kernel: tpu_custom_call.1
= control target key start
LH: loop header
LB: loop body
LE: loop exit
PB: predicated region body
PF: predicated region fallthrough
CT: control target
= control target key end

     0   :  { %s2553_s0 = inlined_call_operand.hbm [shape: s32[1,1024], index: 0, kind: input, shape index: {}]   ;;  %s2554_s1 = inlined_call_operand.hbm [shape: s32[1,1024], index: 1, kind: input, shape index: {}]   ;;  %s2555_s2 = inlined_call_operand.vmem [shape: f32[32,64], index: 2, kind: input, shape index: {}]   ;;  %s2556_s3 = inlined_call_operand.vmem [shape: f32[32,32], index: 3, kind: input, shape index: {}]   ;;  %s2557_s4 = inlined_call_operand.hbm [shape: f32[32,32], index: 4, kind: input, shape index: {}]   ;;  %s2558_s5 = inlined_call_operand.vmem [shape: f32[32,1], index: 5, kind: input, shape index: {}]   ;;  %s2559_s6 = inlined_call_operand.vmem [shape: f32[32,1], index: 6, kind: input, shape index: {}]   ;;  %s2560_s7 = inlined_call_operand.<no memory space> [shape: f32[1,1], index: 7, kind: input, shape index: {}]   ;;  %s2561_s8 = inlined_call_operand.hbm [shape: f32[1,1024], index: 8, kind: output, shape index: {}]  }
   0x1   :  { %2569 = sst [smem:[#allocation17_spill]] %s2557_s4 }
   0x2   :  { %13 = sst [smem:[#allocation2]] %s2560_s7 }
   0x3   :  { %14 = vsyncpa [#allocation4], 0 }
   0x4   :  { %16 = vsyncpa [#allocation4 + $0x1], 0 }
   0x5   :  { %17 = vsyncpa [#allocation7], 0 }
   0x6   :  { %19 = vsyncpa [#allocation7 + $0x1], 0 }
   0x7   :  { %20 = vsyncpa [#allocation5], 0 }
   0x8   :  { %22 = vsyncpa [#allocation5 + $0x1], 0  ;;  %s1993_s29 = smov 0   ;;  %s1995_s30 = smov 0  }
   0x9   :  { %s1997_s9 = smov 0   ;;  %s1999_s10 = smov 0  }
   0xa LB: > { %2570 = sst [smem:[#allocation14_spill]] %s1929_s9  ;;  %s2014_s7 = sadd.s32 4294967295, %s1933_s10   ;;  %s1933_s10 = sphi %s1999_s10, %s2588_s10   ;;  %s1929_s9 = sphi %s1997_s9, %s2590_s9   ;;  %s1925_s30 = sphi %s1995_s30, %s2592_s30   ;;  %s1921_s29 = sphi %s1993_s29, %s2591_s29  }
   0xb   : > { %s1490_s11 = sadd.s32 4294967294, %s1933_s10   ;;  %p48_p0 = scmp.ne.s32.totalorder %s1925_s30, %s1921_s29 }
   0xc   : > { %p2565_p1 = scmp.eq.s32.totalorder %s2014_s7, 0  ;;  %p230_p3 = scmp.eq.s32.totalorder %s1490_s11, 1 }
   0xd   : > { %p1491_p5 = scmp.ge.s32.totalorder %s1933_s10, 1  ;;  %p237_p7 = scmp.lt.s32.totalorder %s1933_s10, 3 }
   0xe   : > { %p2023_p4 = por %p2565_p1, %p48_p0  ;;  %p2028_p6 = por %p230_p3, %p48_p0 }
   0xf   : > { %p2033_p8 = pnand %p1491_p5, %p237_p7  ;;  %s1935_s15 = smov [#allocation8]  }
  0x10   : > { %s2571_s12 = scalar_select %p2023_p4, 1, 0 }
  0x11   : > { %s2572_s13 = scalar_select %p2028_p6, 1, 0 }
  0x12   : > { %s2573_s14 = scalar_select %p2033_p8, 1, 0 }
  0x13   : > { %s255_s16 = sshll.u32 %s1935_s15, 4  ;;  %p1719_p9 = pneg %p2033_p8  ;;  %s256_s16 = int_to_ptr.vmem [resolvable:$true] %s255_s16 }
  0x14   : > { %s2047_s18 = sadd.s32 1, %s1933_s10   ;;  %s35_s19 = sadd.s32 1, %s1929_s9 }
  0x15   : > { %p2042_p11 = pnand %p1719_p9, %p2565_p1  ;;  %2575 = sst [smem:[#allocation15_spill]] %s2047_s18 }
  0x16   : > { %s32_s20 = ssub.s32 %s1933_s10, %s2047_s18  ;;  %s1790_s21 = scalar_lea.vmem %s256_s16, 512 }
  0x17   : > { %p1781_p12 = pneg %p2042_p11  ;;  %p1791_p13 = scmp.ne.s32.totalorder %s256_s16, %s1790_s21 }
  0x18   : > { %p1798_p5 = scmp.lt.s32.totalorder %s256_s16, %s256_s16  ;;  %p1799_p7 = scmp.lt.s32.totalorder %s1790_s21, %s1790_s21 }
  0x19   : > { %p1793_p0 = pnand %p1791_p13, %p1781_p12 }
  0x1a   : > { %p1800_p10 = por %p1799_p7, %p1798_p5 }
  0x1b   : > { %p1794_p3 = pneg %p1793_p0 }
  0x1d   : > { %p1801_p2 = pnand %p1800_p10, %p1794_p3 }
  0x1f   : > { %1804 = shalt.err (!%p1801_p2)
}
  0x20   : > { %s1936_s22 = smov 128   ;;  %s1937_s23 = smov 8  }
  0x21   : > { %s2576_s4 = sld [smem:[#allocation17_spill]]  ;;  %p33_p9 = scmp.eq.s32.totalorder %s32_s20, 0 }
  0x22   : > { %p42_p12 = scmp.ne.s32.totalorder %s1929_s9, %s1925_s30  ;;  %p43_p10 = scmp.eq.s32.totalorder %s1933_s10, 0 }
  0x23   : > { %p1735_p2 = scmp.lt.s32.totalorder %s1933_s10, 2  ;;  %p2578_p0 = scmp.eq.s32.totalorder %s2014_s7, 1 }
  0x24   : > { %s2064_s26 = scalar_select %p33_p9, %s1929_s9, %s35_s19  }
  0x25   : > { %p44_p13 = por %p43_p10, %p42_p12  ;;  %p2068_p3 = por %p2578_p0, %p42_p12 }
  0x26   : > { %2577 = sst [smem:[#allocation16_spill]] %s2064_s26  ;;  %s278_s28 = sand.u32 1, %s1929_s9  }
  0x27   : > { %1722 = dma.hbm_to_vmem [thread:$0]  (!%p2042_p11), %s2576_s4, 512, %s256_s16, [#allocation7], %s1936_s22, %s1936_s22, %s1937_s23  }
  0x28   : > { %s2579_s27 = scalar_select %p2068_p3, 1, 0 }
  0x29   : > { %s1662_s11 = sshll.u32 %s1933_s10, 6  ;;  %s2074_s15 = sshll.u32 %s278_s28, 2 }
  0x2a   : > { %s2079_s16 = scalar_lea.hbm %s2553_s0, %s1662_s11  ;;  %s282_s19 = scalar_lea.vmem [#allocation3], %s2074_s15 }
  0x2b   : > { %s290_s20 = sshll.u32 %s282_s19, 4  ;;  %p2082_p11 = pnand %p1735_p2, %p44_p13  ;;  %s291_s20 = int_to_ptr.vmem [resolvable:$true] %s290_s20 }
  0x2c   : > { %s2089_s25 = scalar_lea.hbm %s2554_s1, %s1662_s11  ;;  %s279_s17 = scalar_lea.sflag [#allocation4], %s278_s28 }
  0x2d   : > { %s1805_s21 = scalar_lea.hbm %s2079_s16, 64  ;;  %p1807_p7 = pneg %p2082_p11 }
  0x2e   : > { %p1806_p5 = scmp.ne.s32.totalorder %s2079_s16, %s1805_s21  ;;  %s1810_s26 = scalar_lea.hbm %s2553_s0, 128 }
  0x2f   : > { %p1811_p10 = scmp.lt.s32.totalorder %s2079_s16, %s2553_s0  ;;  %p1812_p2 = scmp.lt.s32.totalorder %s1810_s26, %s1805_s21 }
  0x30   : > { %p1808_p9 = pnand %p1807_p7, %p1806_p5 }
  0x31   : > { %p1813_p13 = por %p1812_p2, %p1811_p10 }
  0x32   : > { %p1809_p12 = pneg %p1808_p9 }
  0x34   : > { %p1814_p0 = pnand %p1813_p13, %p1809_p12 }
  0x36   : > { %1817 = shalt.err (!%p1814_p0)
}
  0x37   : > { %s1818_s28 = scalar_lea.vmem %s291_s20, 64  ;;  %s1938_s11 = smov [#allocation3]  }
  0x38   : > { %p1819_p1 = scmp.ne.s32.totalorder %s291_s20, %s1818_s28  ;;  %s1823_s23 = sshll.u32 %s1938_s11, 4  ;;  %s1824_s23 = int_to_ptr.vmem [resolvable:$false] %s1823_s23 }
  0x39   : > { %s1825_s4 = scalar_lea.vmem %s1824_s23, 128  ;;  %p1826_p9 = scmp.lt.s32.totalorder %s291_s20, %s1824_s23 }
  0x3a   : > { %p1821_p6 = pnand %p1819_p1, %p1807_p7  ;;  %p1827_p3 = scmp.lt.s32.totalorder %s1825_s4, %s1818_s28 }
  0x3c   : > { %p1822_p5 = pneg %p1821_p6  ;;  %p1828_p4 = por %p1827_p3, %p1826_p9 }
  0x3e   : > { %p1829_p8 = pnand %p1828_p4, %p1822_p5 }
  0x40   : > { %1832 = shalt.err (!%p1829_p8)
}
  0x41   : > { %1726 = dma.hbm_to_vmem [thread:$0]  (!%p2082_p11), %s2079_s16, 64, %s291_s20, %s279_s17  }
  0x42   : > { %s297_s9 = sand.u32 1, %s1933_s10   ;;  %s301_s18 = scalar_lea.vmem [#allocation6], %s2074_s15 }
  0x43   : > { %s309_s26 = sshll.u32 %s301_s18, 4  ;;  %s298_s24 = scalar_lea.sflag [#allocation7], %s297_s9  ;;  %s310_s26 = int_to_ptr.vmem [resolvable:$true] %s309_s26 }
  0x44   : > { %s1833_s21 = scalar_lea.hbm %s2089_s25, 64  ;;  %s1838_s11 = scalar_lea.hbm %s2554_s1, 128 }
  0x45   : > { %p1834_p1 = scmp.ne.s32.totalorder %s2089_s25, %s1833_s21  ;;  %p1839_p8 = scmp.lt.s32.totalorder %s2089_s25, %s2554_s1 }
  0x46   : > { %p1840_p3 = scmp.lt.s32.totalorder %s1838_s11, %s1833_s21 }
  0x47   : > { %p1836_p4 = pnand %p1834_p1, %p1807_p7 }
  0x48   : > { %p1841_p12 = por %p1840_p3, %p1839_p8 }
  0x49   : > { %p1837_p6 = pneg %p1836_p4 }
  0x4b   : > { %p1842_p10 = pnand %p1841_p12, %p1837_p6 }
  0x4d   : > { %1845 = shalt.err (!%p1842_p10)
}
  0x4e   : > { %s1846_s15 = scalar_lea.vmem %s310_s26, 64  ;;  %s1939_s16 = smov [#allocation6]  }
  0x4f   : > { %p1847_p2 = scmp.ne.s32.totalorder %s310_s26, %s1846_s15  ;;  %s1851_s20 = sshll.u32 %s1939_s16, 4  ;;  %s1852_s20 = int_to_ptr.vmem [resolvable:$false] %s1851_s20 }
  0x50   : > { %s1853_s17 = scalar_lea.vmem %s1852_s20, 128  ;;  %p1854_p5 = scmp.lt.s32.totalorder %s310_s26, %s1852_s20 }
  0x51   : > { %p1849_p13 = pnand %p1847_p2, %p1807_p7  ;;  %p1855_p9 = scmp.lt.s32.totalorder %s1853_s17, %s1846_s15 }
  0x53   : > { %p1850_p0 = pneg %p1849_p13  ;;  %p1856_p1 = por %p1855_p9, %p1854_p5 }
  0x55   : > { %p1857_p4 = pnand %p1856_p1, %p1850_p0 }
  0x57   : > { %1860 = shalt.err (!%p1857_p4)
}
  0x58   : > { %1729 = dma.hbm_to_vmem [thread:$0]  (!%p2082_p11), %s2089_s25, 64, %s310_s26, %s298_s24  }
  0x59   : > { %p2581_p6 = scmp.ne.s32.totalorder %s2573_s14, 0 }
  0x5a   : > { %s2134_s9 = sand.u32 (!%p2581_p6), 1, %s1925_s30   ;;  %p2582_p7 = scmp.ne.s32.totalorder (!%p2581_p6), %s2571_s12, 0 }
  0x5b   : > { %318 = sbr.rel (%p2581_p6) target bundleno = 584 (0x248), region = 52  ;;  %s2137_s18 = sshll.u32 (!%p2581_p6), %s2134_s9, 2 }
  0x5c   : > { %s321_s21 = scalar_lea.sflag (!%p2581_p6), [#allocation4], %s2134_s9  ;;  %s324_s19 = scalar_lea.vmem (!%p2581_p6), [#allocation3], %s2137_s18 }
  0x60   : > { %1904 = dma.done.wait (%p2582_p7), %s321_s21, 64  }
  0x61   : > { %1906 = vsyncadd (%p2582_p7), %s321_s21, 4294967232  ;;  %s329_s14 = sand.u32 1, %s2014_s7   ;;  %s333_s25 = scalar_lea.vmem [#allocation6], %s2137_s18 }
  0x62   : > { %s330_s22 = scalar_lea.sflag [#allocation7], %s329_s14 }
  0x63   : > { %1908 = dma.done.wait (%p2582_p7), %s330_s22, 64  }
  0x64   : > { %1910 = vsyncadd (%p2582_p7), %s330_s22, 4294967232  ;;  %p2583_p11 = scmp.eq.s32.totalorder %s2014_s7, 0 }
  0x66   : > { %1912 = dma.done.wait (%p2583_p11), [#allocation7], 512   ;;  %p2584_p8 = pmov %p2583_p11 }
  0x67   : > { %v378_v0 = vlaneseq  ;;  %vm621_vm0 = vcmask 261120   ;;  %v620_v2 = vld [vmem:[%s2555_s2 + $0x18] sm:$0xff]  ;;  %v619_v3 = vld [vmem:[%s2555_s2 + $0x10] sm:$0xff]  ;;  %v618_v7 = vld [vmem:[%s2555_s2 + $0x8] sm:$0xff]  ;;  %v1940_v25 = vmov 1.0   ;;  %v1941_v34 = vmov 0.0  }
  0x68   : > { %1914 = vsyncadd (%p2584_p8), [#allocation7], 4294966784  ;;  %1695 = vmatprep.subr.mxu1 %v620_v2  ;;  %v719_v4 = vld [vmem:[#allocation8] sm:$0xff]  ;;  %1681 = vmatprep.subr.mxu0 %v620_v2  ;;  %v617_v10 = vld [vmem:[%s2555_s2] sm:$0xff]  ;;  %v1942_v37 = vmov 0   ;;  %s1664_s24 = sshll.u32 %s2014_s7, 6 }
  0x69   : > { %v2156_v1 = vshrl.u32 %v378_v0, 7  ;;  %1696 = vmatpush3.msra.mxu1 %v620_v2  ;;  %1703 = vmatprep.mubr.msk.f32.mxu1 %vm621_vm0, %v719_v4  ;;  %v500_v12 = vld [vmem:[%s333_s25] sm:$0xf]  ;;  %v720_v15 = vld [vmem:[#allocation8 + $0x8] sm:$0xff]  ;;  %v721_v17 = vld [vmem:[#allocation8 + $0x10] sm:$0xff]  ;;  %s374_s28 = scalar_lea.vmem [#allocation9], %s2137_s18  ;;  %s1386_s4 = scalar_lea.hbm %s2561_s8, %s1664_s24 }
  0x6a   : > { %1697 = vmatprep.subr.mxu1 %v619_v3  ;;  %1682 = vmatpush3.msra.mxu0 %v620_v2  ;;  %v613_v18 = vld [vmem:[%s2556_s3] sm:$0xff]  ;;  %v614_v21 = vld [vmem:[%s2556_s3 + $0x8] sm:$0xff]  ;;  %v615_v22 = vld [vmem:[%s2556_s3 + $0x10] sm:$0xff]  ;;  %s1388_s11 = sshll.u32 %s374_s28, 4  ;;  %s1374_s15 = scalar_lea.sflag [#allocation5], %s2134_s9  ;;  %s1389_s11 = int_to_ptr.vmem [resolvable:$true] %s1388_s11 }
  0x6b   : > { %v394_v5 = vsub.s32 1, %v2156_v1  ;;  %v402_v6 = vsub.s32 3, %v2156_v1  ;;  %v390_v8 = vsub.s32 0, %v2156_v1  ;;  %v398_v9 = vsub.s32 2, %v2156_v1  ;;  %1698 = vmatpush3.msra.mxu1 %v619_v3  ;;  %1683 = vmatprep.subr.mxu0 %v619_v3  ;;  %v722_v23 = vld [vmem:[#allocation8 + $0x18] sm:$0xff]  ;;  %v616_v26 = vld [vmem:[%s2556_s3 + $0x18] sm:$0xff] }
  0x6c   : > { %v2176_v11 = vadd.s32 56, %v2156_v1  ;;  %1699 = vmatprep.subr.mxu1 %v618_v7  ;;  %1684 = vmatpush3.msra.mxu0 %v619_v3  ;;  %v2198_v20 = vadd.s32 48, %v2156_v1  ;;  %v2216_v24 = vadd.s32 40, %v2156_v1  ;;  %v2232_v27 = vadd.s32 32, %v2156_v1  ;;  %v387_v31 = vld [vmem:[%s324_s19] sm:$0xf] }
  0x6d   : > { %v2180_v13 = vrot.slane %v500_v12, %v394_v5  ;;  %v2184_v14 = vrot.slane %v500_v12, %v402_v6  ;;  %1700 = vmatpush3.msra.mxu1 %v618_v7  ;;  %1685 = vmatprep.subr.mxu0 %v618_v7  ;;  %v2188_v16 = vrot.slane %v500_v12, %v390_v8  ;;  %v2247_v28 = vadd.s32 24, %v2156_v1  ;;  %v1201_v35 = vld [vmem:[%s2558_s5] sm:$0xff]  ;;  %v1203_v36 = vld [vmem:[%s2558_s5 + $0x10] sm:$0xff]  ;;  %v1202_v38 = vld [vmem:[%s2558_s5 + $0x8] sm:$0xff]  ;;  %s1333_s19 = sld [smem:[#allocation2]]  ;;  %s1861_s16 = scalar_lea.vmem %s1389_s11, 64 }
  0x6e   : > { %1701 = vmatprep.subr.mxu1 %v617_v10  ;;  %1686 = vmatpush3.msra.mxu0 %v618_v7  ;;  %v2195_v19 = vrot.slane %v500_v12, %v398_v9  ;;  %v2262_v29 = vadd.s32 16, %v2156_v1  ;;  %v2277_v30 = vadd.s32 8, %v2156_v1  ;;  %v2329_v32 = vrot.slane %v387_v31, %v394_v5  ;;  %v1204_v39 = vld [vmem:[%s2558_s5 + $0x18] sm:$0xff]  ;;  %v1257_v40 = vld [vmem:[%s2559_s6] sm:$0xff]  ;;  %v1258_v41 = vld [vmem:[%s2559_s6 + $0x8] sm:$0xff]  ;;  %p1862_p3 = scmp.ne.s32.totalorder %s1389_s11, %s1861_s16  ;;  %p2585_p12 = scmp.ne.s32.totalorder %s2579_s27, 0 }
  0x6f   : > { %1702 = vmatpush3.msra.mxu1 %v617_v10  ;;  %1687 = vmatprep.subr.mxu0 %v617_v10  ;;  %vm546_vm1 = vcmp.eq.s32.totalorder %v2176_v11, %v2180_v13  ;;  %vm548_vm2 = vcmp.eq.s32.totalorder %v2176_v11, %v2184_v14  ;;  %vm545_vm3 = vcmp.eq.s32.totalorder %v2176_v11, %v2188_v16  ;;  %v1259_v42 = vld [vmem:[%s2559_s6 + $0x10] sm:$0xff]  ;;  %v1260_v43 = vld [vmem:[%s2559_s6 + $0x18] sm:$0xff]  ;;  %s1944_s20 = smov [#allocation9]  }
  0x70   : > { %1704 = vmatmul.mubr.msk.f32.vlgmr.msra.gmra.mxu1 %vm621_vm0, %v720_v15  ;;  %1688 = vmatpush3.msra.mxu0 %v617_v10  ;;  %vm547_vm4 = vcmp.eq.s32.totalorder %v2176_v11, %v2195_v19  ;;  %vm542_vm5 = vcmp.eq.s32.totalorder %v2198_v20, %v2180_v13  ;;  %vm544_vm6 = vcmp.eq.s32.totalorder %v2198_v20, %v2184_v14  ;;  %p1863_p10 = pnand %p1862_p3, %p2585_p12  ;;  %s1865_s7 = sshll.u32 %s1944_s20, 4  ;;  %s1866_s7 = int_to_ptr.vmem [resolvable:$false] %s1865_s7 }
  0x71   : > { %1706 = vmatprep.mubr.msk.f32.mxu1 %vm621_vm0, %v721_v17  ;;  %1689 = vmatprep.mubr.msk.f32.mxu0 %vm621_vm0, %v613_v18  ;;  %vm541_vm7 = vcmp.eq.s32.totalorder %v2198_v20, %v2188_v16  ;;  %vm543_vm8 = vcmp.eq.s32.totalorder %v2198_v20, %v2195_v19  ;;  %vm538_vm9 = vcmp.eq.s32.totalorder %v2216_v24, %v2180_v13  ;;  %s1867_s18 = scalar_lea.vmem %s1866_s7, 128  ;;  %p1868_p13 = scmp.lt.s32.totalorder %s1389_s11, %s1866_s7 }
  0x72   : > { %1690 = vmatmul.mubr.msk.f32.vlgmr.msra.gmra.mxu0 %vm621_vm0, %v614_v21  ;;  %1577 = vmatprep.subr.msk.mxu0 %vm546_vm1, %v1940_v25  ;;  %vm540_vm10 = vcmp.eq.s32.totalorder %v2216_v24, %v2184_v14  ;;  %vm537_vm11 = vcmp.eq.s32.totalorder %v2216_v24, %v2188_v16  ;;  %vm539_vm12 = vcmp.eq.s32.totalorder %v2216_v24, %v2195_v19  ;;  %p1864_p2 = pneg %p1863_p10  ;;  %p1869_p0 = scmp.lt.s32.totalorder %s1867_s18, %s1861_s16 }
  0x73   : > { %1692 = vmatprep.mubr.msk.f32.mxu0 %vm621_vm0, %v615_v22  ;;  %1597 = vmatprep.subr.msk.mxu1 %vm548_vm2, %v1940_v25  ;;  %vm534_vm13 = vcmp.eq.s32.totalorder %v2232_v27, %v2180_v13  ;;  %vm536_vm14 = vcmp.eq.s32.totalorder %v2232_v27, %v2184_v14  ;;  %vm533_vm15 = vcmp.eq.s32.totalorder %v2232_v27, %v2188_v16 }
  0x74   : > { %1707 = vmatmul.mubr.msk.f32.gmra.mxu1 %vm621_vm0, %v722_v23  ;;  %1578 = vmatpush1.msk.msra.mxu0 %vm545_vm3, %v1940_v25  ;;  %vm530_vm1 = vcmp.eq.s32.totalorder %v2247_v28, %v2180_v13  ;;  %vm532_vm2 = vcmp.eq.s32.totalorder %v2247_v28, %v2184_v14  ;;  %vm529_vm3 = vcmp.eq.s32.totalorder %v2247_v28, %v2188_v16  ;;  %p1870_p5 = por %p1869_p0, %p1868_p13 }
  0x75   : > { %1598 = vmatpush1.msk.msra.mxu1 %vm547_vm4, %v1940_v25  ;;  %1579 = vmatprep.subr.msk.mxu0 %vm542_vm5, %v1940_v25  ;;  %vm531_vm4 = vcmp.eq.s32.totalorder %v2247_v28, %v2195_v19  ;;  %vm526_vm5 = vcmp.eq.s32.totalorder %v2262_v29, %v2180_v13  ;;  %v2333_v33 = vrot.slane %v387_v31, %v402_v6 }
  0x76   : > { %1693 = vmatmul.mubr.msk.f32.gmra.mxu0 %vm621_vm0, %v616_v26  ;;  %1599 = vmatprep.subr.msk.mxu1 %vm544_vm6, %v1940_v25  ;;  %vm535_vm0 = vcmp.eq.s32.totalorder %v2232_v27, %v2195_v19  ;;  %vm528_vm6 = vcmp.eq.s32.totalorder %v2262_v29, %v2184_v14  ;;  %v2371_v44 = vrot.slane %v387_v31, %v390_v8  ;;  %p1871_p9 = pnand %p1870_p5, %p1864_p2 }
  0x77   : > { %1580 = vmatpush1.msk.msra.mxu0 %vm541_vm7, %v1940_v25  ;;  %1600 = vmatpush1.msk.msra.mxu1 %vm543_vm8, %v1940_v25  ;;  %vm525_vm7 = vcmp.eq.s32.totalorder %v2262_v29, %v2188_v16  ;;  %vm527_vm8 = vcmp.eq.s32.totalorder %v2262_v29, %v2195_v19  ;;  %v2375_v45 = vrot.slane %v387_v31, %v398_v9 }
  0x78   : > { %1581 = vmatprep.subr.msk.mxu0 %vm538_vm9, %v1940_v25  ;;  %1601 = vmatprep.subr.msk.mxu1 %vm540_vm10, %v1940_v25  ;;  %vm522_vm9 = vcmp.eq.s32.totalorder %v2277_v30, %v2180_v13  ;;  %vm524_vm10 = vcmp.eq.s32.totalorder %v2277_v30, %v2184_v14 }
  0x79   : > { %1582 = vmatpush1.msk.msra.mxu0 %vm537_vm11, %v1940_v25  ;;  %1602 = vmatpush1.msk.msra.mxu1 %vm539_vm12, %v1940_v25  ;;  %vm521_vm11 = vcmp.eq.s32.totalorder %v2277_v30, %v2188_v16  ;;  %vm523_vm12 = vcmp.eq.s32.totalorder %v2277_v30, %v2195_v19 }
  0x7a   : > { %1583 = vmatprep.subr.msk.mxu0 %vm534_vm13, %v1940_v25  ;;  %1603 = vmatprep.subr.msk.mxu1 %vm536_vm14, %v1940_v25  ;;  %vm518_vm13 = vcmp.eq.s32.totalorder %v2156_v1, %v2180_v13  ;;  %vm520_vm14 = vcmp.eq.s32.totalorder %v2156_v1, %v2184_v14 }
  0x7b   : > { %1584 = vmatpush1.msk.msra.mxu0 %vm533_vm15, %v1940_v25  ;;  %1604 = vmatpush1.msk.msra.mxu1 %vm535_vm0, %v1940_v25  ;;  %vm517_vm15 = vcmp.eq.s32.totalorder %v2156_v1, %v2188_v16  ;;  %vm519_vm0 = vcmp.eq.s32.totalorder %v2156_v1, %v2195_v19 }
  0x7c   : > { %1585 = vmatprep.subr.msk.mxu0 %vm530_vm1, %v1940_v25  ;;  %1605 = vmatprep.subr.msk.mxu1 %vm532_vm2, %v1940_v25  ;;  %vm433_vm1 = vcmp.eq.s32.totalorder %v2176_v11, %v2329_v32  ;;  %vm435_vm2 = vcmp.eq.s32.totalorder %v2176_v11, %v2333_v33 }
  0x7d   : > { %1586 = vmatpush1.msk.msra.mxu0 %vm529_vm3, %v1940_v25  ;;  %1606 = vmatpush1.msk.msra.mxu1 %vm531_vm4, %v1940_v25  ;;  %vm820_vm3 = vcmask 523264   ;;  %vm432_vm4 = vcmp.eq.s32.totalorder %v2176_v11, %v2371_v44 }
  0x7e   : > { %1587 = vmatprep.subr.msk.mxu0 %vm526_vm5, %v1940_v25  ;;  %1607 = vmatprep.subr.msk.mxu1 %vm528_vm6, %v1940_v25  ;;  %vm434_vm5 = vcmp.eq.s32.totalorder %v2176_v11, %v2375_v45  ;;  %vm429_vm6 = vcmp.eq.s32.totalorder %v2198_v20, %v2329_v32 }
  0x7f   : > { %1588 = vmatpush1.msk.msra.mxu0 %vm525_vm7, %v1940_v25  ;;  %1608 = vmatpush1.msk.msra.mxu1 %vm527_vm8, %v1940_v25  ;;  %vm431_vm7 = vcmp.eq.s32.totalorder %v2198_v20, %v2333_v33  ;;  %vm428_vm8 = vcmp.eq.s32.totalorder %v2198_v20, %v2371_v44 }
  0x80   : > { %1589 = vmatprep.subr.msk.mxu0 %vm522_vm9, %v1940_v25  ;;  %1609 = vmatprep.subr.msk.mxu1 %vm524_vm10, %v1940_v25  ;;  %vm430_vm9 = vcmp.eq.s32.totalorder %v2198_v20, %v2375_v45  ;;  %vm425_vm10 = vcmp.eq.s32.totalorder %v2216_v24, %v2329_v32 }
  0x81   : > { %1590 = vmatpush1.msk.msra.mxu0 %vm521_vm11, %v1940_v25  ;;  %1610 = vmatpush1.msk.msra.mxu1 %vm523_vm12, %v1940_v25  ;;  %vm427_vm11 = vcmp.eq.s32.totalorder %v2216_v24, %v2333_v33  ;;  %vm424_vm12 = vcmp.eq.s32.totalorder %v2216_v24, %v2371_v44 }
  0x82   : > { %1591 = vmatprep.subr.msk.mxu0 %vm518_vm13, %v1940_v25  ;;  %1611 = vmatprep.subr.msk.mxu1 %vm520_vm14, %v1940_v25  ;;  %vm426_vm13 = vcmp.eq.s32.totalorder %v2216_v24, %v2375_v45  ;;  %vm421_vm14 = vcmp.eq.s32.totalorder %v2232_v27, %v2329_v32 }
  0x83   : > { %1592 = vmatpush1.msk.msra.mxu0 %vm517_vm15, %v1940_v25  ;;  %1612 = vmatpush1.msk.msra.mxu1 %vm519_vm0, %v1940_v25  ;;  %vm423_vm15 = vcmp.eq.s32.totalorder %v2232_v27, %v2333_v33  ;;  %vm420_vm0 = vcmp.eq.s32.totalorder %v2232_v27, %v2371_v44 }
  0x84   : > { %897 = vmatprep.mubr.f32.mxu0 %v1941_v34  ;;  %986 = vmatprep.mubr.f32.mxu1 %v1941_v34 }
  0x85   : > { %1617 = vmatprep.subr.msk.mxu0 %vm433_vm1, %v1940_v25  ;;  %1637 = vmatprep.subr.msk.mxu1 %vm435_vm2, %v1940_v25  ;;  %vm422_vm1 = vcmp.eq.s32.totalorder %v2232_v27, %v2375_v45  ;;  %vm417_vm2 = vcmp.eq.s32.totalorder %v2247_v28, %v2329_v32 }
  0x86   : > { %1777 = vset.pattern.permute.xlu0 %v1942_v37  ;;  %1778 = vset.pattern.permute.xlu1 %v1942_v37 }
  0x87   : > { %1207 = vperm.xlu0 %1777, %v1201_v35   ;;  %1217 = vperm.xlu1 %1778, %v1203_v36  }
  0x8b   : > { %1212 = vperm.xlu0 %1777, %v1202_v38   ;;  %1222 = vperm.xlu1 %1778, %v1204_v39  }
  0x8f   : > { %1263 = vperm.xlu0 %1777, %v1257_v40   ;;  %1268 = vperm.xlu1 %1778, %v1258_v41  }
  0x93   : > { %1273 = vperm.xlu0 %1777, %v1259_v42   ;;  %1278 = vperm.xlu1 %1778, %v1260_v43  }
 0x102   : > { %v1208_v6 = vpop.permute.xlu0 %1207  ;;  %v1218_v11 = vpop.permute.xlu1 %1217 }
 0x106   : > { %v1213_v16 = vpop.permute.xlu0 %1212  ;;  %v2505_v27 = vpop.permute.xlu1 %1222 }
 0x10a   : > { %v1264_v38 = vpop.permute.xlu0 %1263 }
 0x130   : > { %v1705_v46 = vpop.f32.mrf.mxu1 }
 0x132   : > { %v801_v47 = vpop.f32.mrf.mxu1  ;;  %v1691_v50 = vpop.f32.mrf.mxu0 }
 0x133   : > { %1593 = vmatmul.mubr.msk.f32.vlgmr.msra.gmra.mxu0 %vm820_vm3, %v801_v47  ;;  %1613 = vmatmul.mubr.msk.f32.vlgmr.msra.gmra.mxu1 %vm820_vm3, %v801_v47 }
 0x134   : > { %1618 = vmatpush1.msk.msra.mxu0 %vm432_vm4, %v1940_v25  ;;  %1638 = vmatpush1.msk.msra.mxu1 %vm434_vm5, %v1940_v25  ;;  %v1708_v48 = vpop.f32.mrf.mxu1  ;;  %vm419_vm4 = vcmp.eq.s32.totalorder %v2247_v28, %v2333_v33  ;;  %vm416_vm5 = vcmp.eq.s32.totalorder %v2247_v28, %v2371_v44  ;;  %v700_v51 = vpop.f32.mrf.mxu0 }
 0x135   : > { %1619 = vmatprep.subr.msk.mxu0 %vm429_vm6, %v1940_v25  ;;  %1639 = vmatprep.subr.msk.mxu1 %vm431_vm7, %v1940_v25  ;;  %vm418_vm6 = vcmp.eq.s32.totalorder %v2247_v28, %v2375_v45  ;;  %vm413_vm7 = vcmp.eq.s32.totalorder %v2262_v29, %v2329_v32 }
 0x136   : > { %1620 = vmatpush1.msk.msra.mxu0 %vm428_vm8, %v1940_v25  ;;  %1640 = vmatpush1.msk.msra.mxu1 %vm430_vm9, %v1940_v25  ;;  %v811_v49 = vpop.f32.mrf.mxu1  ;;  %vm415_vm8 = vcmp.eq.s32.totalorder %v2262_v29, %v2333_v33  ;;  %vm412_vm9 = vcmp.eq.s32.totalorder %v2262_v29, %v2371_v44  ;;  %v1694_v52 = vpop.f32.mrf.mxu0 }
 0x137   : > { %903 = vmatprep.mubr.f32.mxu0 %v1941_v34  ;;  %992 = vmatprep.mubr.f32.mxu1 %v1941_v34 }
 0x138   : > { %1621 = vmatprep.subr.msk.mxu0 %vm425_vm10, %v1940_v25  ;;  %1641 = vmatprep.subr.msk.mxu1 %vm427_vm11, %v1940_v25  ;;  %vm414_vm10 = vcmp.eq.s32.totalorder %v2262_v29, %v2375_v45  ;;  %vm409_vm11 = vcmp.eq.s32.totalorder %v2277_v30, %v2329_v32  ;;  %v710_v53 = vpop.f32.mrf.mxu0 }
 0x139   : > { %1594 = vmatmul.mubr.msk.f32.gmra.mxu0 %vm820_vm3, %v1705_v46  ;;  %1614 = vmatmul.mubr.msk.f32.gmra.mxu1 %vm820_vm3, %v1705_v46 }
 0x13a   : > { %1622 = vmatpush1.msk.msra.mxu0 %vm424_vm12, %v1940_v25  ;;  %1642 = vmatpush1.msk.msra.mxu1 %vm426_vm13, %v1940_v25  ;;  %vm411_vm12 = vcmp.eq.s32.totalorder %v2277_v30, %v2333_v33  ;;  %vm408_vm13 = vcmp.eq.s32.totalorder %v2277_v30, %v2371_v44 }
 0x13b   : > { %1623 = vmatprep.subr.msk.mxu0 %vm421_vm14, %v1940_v25  ;;  %1643 = vmatprep.subr.msk.mxu1 %vm423_vm15, %v1940_v25  ;;  %vm410_vm14 = vcmp.eq.s32.totalorder %v2277_v30, %v2375_v45  ;;  %vm405_vm15 = vcmp.eq.s32.totalorder %v2156_v1, %v2329_v32 }
 0x13c   : > { %1624 = vmatpush1.msk.msra.mxu0 %vm420_vm0, %v1940_v25  ;;  %1644 = vmatpush1.msk.msra.mxu1 %vm422_vm1, %v1940_v25  ;;  %vm407_vm0 = vcmp.eq.s32.totalorder %v2156_v1, %v2333_v33  ;;  %vm404_vm1 = vcmp.eq.s32.totalorder %v2156_v1, %v2371_v44 }
 0x13d   : > { %909 = vmatprep.mubr.f32.mxu0 %v1941_v34  ;;  %998 = vmatprep.mubr.f32.mxu1 %v1941_v34 }
 0x13e   : > { %1625 = vmatprep.subr.msk.mxu0 %vm417_vm2, %v1940_v25  ;;  %1645 = vmatprep.subr.msk.mxu1 %vm419_vm4, %v1940_v25  ;;  %vm406_vm2 = vcmp.eq.s32.totalorder %v2156_v1, %v2375_v45 }
 0x13f   : > { %1595 = vmatmul.mubr.msk.f32.gmra.mxu0 %vm820_vm3, %v811_v49  ;;  %1615 = vmatmul.mubr.msk.f32.gmra.mxu1 %vm820_vm3, %v811_v49 }
 0x140   : > { %1626 = vmatpush1.msk.msra.mxu0 %vm416_vm5, %v1940_v25  ;;  %1646 = vmatpush1.msk.msra.mxu1 %vm418_vm6, %v1940_v25 }
 0x141   : > { %1627 = vmatprep.subr.msk.mxu0 %vm413_vm7, %v1940_v25  ;;  %1647 = vmatprep.subr.msk.mxu1 %vm415_vm8, %v1940_v25 }
 0x142   : > { %1628 = vmatpush1.msk.msra.mxu0 %vm412_vm9, %v1940_v25  ;;  %1648 = vmatpush1.msk.msra.mxu1 %vm414_vm10, %v1940_v25 }
 0x143   : > { %915 = vmatprep.mubr.f32.mxu0 %v1941_v34  ;;  %1004 = vmatprep.mubr.f32.mxu1 %v1941_v34 }
 0x144   : > { %1629 = vmatprep.subr.msk.mxu0 %vm409_vm11, %v1940_v25  ;;  %1649 = vmatprep.subr.msk.mxu1 %vm411_vm12, %v1940_v25 }
 0x145   : > { %1596 = vmatmul.mubr.msk.f32.gmra.mxu0 %vm820_vm3, %v1708_v48  ;;  %1616 = vmatmul.mubr.msk.f32.gmra.mxu1 %vm820_vm3, %v1708_v48 }
 0x146   : > { %1630 = vmatpush1.msk.msra.mxu0 %vm408_vm13, %v1940_v25  ;;  %1650 = vmatpush1.msk.msra.mxu1 %vm410_vm14, %v1940_v25 }
 0x147   : > { %1631 = vmatprep.subr.msk.mxu0 %vm405_vm15, %v1940_v25  ;;  %1651 = vmatprep.subr.msk.mxu1 %vm407_vm0, %v1940_v25 }
 0x148   : > { %1632 = vmatpush1.msk.msra.mxu0 %vm404_vm1, %v1940_v25  ;;  %1652 = vmatpush1.msk.msra.mxu1 %vm406_vm2, %v1940_v25 }
 0x149   : > { %1087 = vmatprep.mubr.f32.mxu0 %v1941_v34  ;;  %1176 = vmatprep.mubr.f32.mxu1 %v1941_v34 }
 0x14a   : > { %1633 = vmatmul.mubr.msk.f32.vlgmr.msra.gmra.mxu0 %vm820_vm3, %v700_v51  ;;  %1653 = vmatmul.mubr.msk.f32.vlgmr.msra.gmra.mxu1 %vm820_vm3, %v700_v51 }
 0x14b   : > { %1093 = vmatprep.mubr.f32.mxu0 %v1941_v34  ;;  %1182 = vmatprep.mubr.f32.mxu1 %v1941_v34 }
 0x14e   : > { %1634 = vmatmul.mubr.msk.f32.gmra.mxu0 %vm820_vm3, %v1691_v50  ;;  %1654 = vmatmul.mubr.msk.f32.gmra.mxu1 %vm820_vm3, %v1691_v50 }
 0x14f   : > { %1099 = vmatprep.mubr.f32.mxu0 %v1941_v34  ;;  %1188 = vmatprep.mubr.f32.mxu1 %v1941_v34 }
 0x152   : > { %1635 = vmatmul.mubr.msk.f32.gmra.mxu0 %vm820_vm3, %v710_v53  ;;  %1655 = vmatmul.mubr.msk.f32.gmra.mxu1 %vm820_vm3, %v710_v53 }
 0x153   : > { %1105 = vmatprep.mubr.f32.mxu0 %v1941_v34  ;;  %1194 = vmatprep.mubr.f32.mxu1 %v1941_v34 }
 0x156   : > { %1636 = vmatmul.mubr.msk.f32.gmra.mxu0 %vm820_vm3, %v1694_v52  ;;  %1656 = vmatmul.mubr.msk.f32.gmra.mxu1 %vm820_vm3, %v1694_v52  ;;  %vm1370_vm3 = vcmp.lt.s32.totalorder %v378_v0, 512 }
 0x1f3   : > { %v899_v54 = vpop.f32.mrf.mxu0  ;;  %v988_v55 = vpop.f32.mrf.mxu1 }
 0x1f5   : > { %v901_v56 = vpop.f32.mrf.mxu0  ;;  %v990_v57 = vpop.f32.mrf.mxu1 }
 0x1f9   : > { %v905_v58 = vpop.f32.mrf.mxu0  ;;  %v994_v59 = vpop.f32.mrf.mxu1 }
 0x1fb   : > { %v907_v60 = vpop.f32.mrf.mxu0  ;;  %v996_v61 = vpop.f32.mrf.mxu1 }
 0x1ff   : > { %v911_v62 = vpop.f32.mrf.mxu0  ;;  %v1000_v63 = vpop.f32.mrf.mxu1 }
 0x201   : > { %v913_v2 = vpop.f32.mrf.mxu0  ;;  %v1002_v3 = vpop.f32.mrf.mxu1 }
 0x205   : > { %v2497_v4 = vpop.f32.mrf.mxu0  ;;  %v2499_v5 = vpop.f32.mrf.mxu1 }
 0x207   : > { %v2501_v7 = vpop.f32.mrf.mxu0  ;;  %v2503_v8 = vpop.f32.mrf.mxu1 }
 0x20a   : > { %v1089_v9 = vpop.f32.mrf.mxu0  ;;  %v1178_v10 = vpop.f32.mrf.mxu1 }
 0x20b   : > { %v1090_v12 = vadd.f32 %v1089_v9, %v899_v54  ;;  %v1179_v13 = vadd.f32 %v1178_v10, %v988_v55 }
 0x20c   : > { %v1091_v14 = vpop.f32.mrf.mxu0  ;;  %v1180_v15 = vpop.f32.mrf.mxu1 }
 0x20d   : > { %v1092_v17 = vadd.f32 %v1091_v14, %v901_v56  ;;  %v1181_v18 = vadd.f32 %v1180_v15, %v990_v57  ;;  %v1225_v21 = vadd.f32 %v1208_v6, %v1090_v12  ;;  %v1227_v22 = vadd.f32 %v1208_v6, %v1179_v13  ;;  %v1274_v15 = vpop.permute.xlu0 %1273 }
 0x20e   : > { %v1095_v19 = vpop.f32.mrf.mxu0  ;;  %v1184_v20 = vpop.f32.mrf.mxu1 }
 0x20f   : > { %v1096_v23 = vadd.f32 %v1095_v19, %v905_v58  ;;  %v1185_v24 = vadd.f32 %v1184_v20, %v994_v59  ;;  %v1226_v28 = vadd.f32 %v1208_v6, %v1092_v17  ;;  %v1228_v29 = vadd.f32 %v1208_v6, %v1181_v18 }
 0x210   : > { %v1097_v25 = vpop.f32.mrf.mxu0  ;;  %v1186_v26 = vpop.f32.mrf.mxu1  ;;  %v1241_v36 = vmax.f32 %v1225_v21, 0.0  ;;  %v1243_v37 = vmax.f32 %v1227_v22, 0.0 }
 0x211   : > { %v1229_v30 = vadd.f32 %v1213_v16, %v1096_v23  ;;  %v1231_v31 = vadd.f32 %v1213_v16, %v1185_v24  ;;  %v1098_v32 = vadd.f32 %v1097_v25, %v907_v60  ;;  %v1187_v33 = vadd.f32 %v1186_v26, %v996_v61 }
 0x212   : > { %v1101_v34 = vpop.f32.mrf.mxu0  ;;  %v1190_v35 = vpop.f32.mrf.mxu1  ;;  %v1242_v51 = vmax.f32 %v1226_v28, 0.0  ;;  %v1244_v52 = vmax.f32 %v1228_v29, 0.0  ;;  %v1281_v61 = vmul.f32 %v1264_v38, %v1241_v36 }
 0x213   : > { %v1102_v39 = vadd.f32 %v1101_v34, %v911_v62  ;;  %v1191_v40 = vadd.f32 %v1190_v35, %v1000_v63  ;;  %v1245_v41 = vmax.f32 %v1229_v30, 0.0  ;;  %v1247_v42 = vmax.f32 %v1231_v31, 0.0  ;;  %v1269_v63 = vpop.permute.xlu1 %1268 }
 0x214   : > { %v1230_v43 = vadd.f32 %v1213_v16, %v1098_v32  ;;  %v1232_v44 = vadd.f32 %v1213_v16, %v1187_v33  ;;  %v1103_v45 = vpop.f32.mrf.mxu0  ;;  %v1192_v46 = vpop.f32.mrf.mxu1  ;;  %v1283_v62 = vmul.f32 %v1264_v38, %v1243_v37  ;;  %v1284_v14 = vmul.f32 %v1264_v38, %v1244_v52 }
 0x215   : > { %v1233_v47 = vadd.f32 %v1218_v11, %v1102_v39  ;;  %v1235_v48 = vadd.f32 %v1218_v11, %v1191_v40  ;;  %v1104_v49 = vadd.f32 %v1103_v45, %v913_v2  ;;  %v1193_v50 = vadd.f32 %v1192_v46, %v1002_v3 }
 0x216   : > { %v1246_v53 = vmax.f32 %v1230_v43, 0.0  ;;  %v1248_v54 = vmax.f32 %v1232_v44, 0.0  ;;  %v1107_v55 = vpop.f32.mrf.mxu0  ;;  %v1196_v56 = vpop.f32.mrf.mxu1  ;;  %v1285_v6 = vmul.f32 %v1269_v63, %v1245_v41  ;;  %v1287_v9 = vmul.f32 %v1269_v63, %v1247_v42 }
 0x217   : > { %v1249_v57 = vmax.f32 %v1233_v47, 0.0  ;;  %v1251_v58 = vmax.f32 %v1235_v48, 0.0  ;;  %v1234_v59 = vadd.f32 %v1218_v11, %v1104_v49  ;;  %v1236_v60 = vadd.f32 %v1218_v11, %v1193_v50  ;;  %v1279_v34 = vpop.permute.xlu1 %1278 }
 0x218   : > { %v1109_v13 = vpop.f32.mrf.mxu0  ;;  %v1198_v2 = vpop.f32.mrf.mxu1  ;;  %v1282_v3 = vmul.f32 %v1264_v38, %v1242_v51  ;;  %v1108_v16 = vadd.f32 %v1107_v55, %v2497_v4  ;;  %v1197_v17 = vadd.f32 %v1196_v56, %v2499_v5  ;;  %v1286_v18 = vmul.f32 %v1269_v63, %v1246_v53 }
 0x219   : > { %v1250_v10 = vmax.f32 %v1234_v59, 0.0  ;;  %v1252_v12 = vmax.f32 %v1236_v60, 0.0  ;;  %v1288_v19 = vmul.f32 %v1269_v63, %v1248_v54  ;;  %v1289_v20 = vmul.f32 %v1274_v15, %v1249_v57 }
 0x21a   : > { %v1291_v11 = vmul.f32 %v1274_v15, %v1251_v58  ;;  %v1237_v21 = vadd.f32 %v2505_v27, %v1108_v16  ;;  %v1239_v22 = vadd.f32 %v2505_v27, %v1197_v17  ;;  %v1110_v23 = vadd.f32 %v1109_v13, %v2501_v7 }
 0x21b   : > { %v1199_v24 = vadd.f32 %v1198_v2, %v2503_v8  ;;  %v1297_v25 = vadd.f32 %v1285_v6, %v1281_v61  ;;  %v1315_v26 = vadd.f32 %v1287_v9, %v1283_v62  ;;  %v1290_v28 = vmul.f32 %v1274_v15, %v1250_v10 }
 0x21c   : > { %v1292_v29 = vmul.f32 %v1274_v15, %v1252_v12  ;;  %v1253_v30 = vmax.f32 %v1237_v21, 0.0  ;;  %v1255_v4 = vmax.f32 %v1239_v22, 0.0  ;;  %v1238_v5 = vadd.f32 %v2505_v27, %v1110_v23 }
 0x21d   : > { %v1240_v31 = vadd.f32 %v2505_v27, %v1199_v24  ;;  %v1306_v32 = vadd.f32 %v1286_v18, %v1282_v3  ;;  %v1324_v33 = vadd.f32 %v1288_v19, %v1284_v14  ;;  %v1298_v35 = vadd.f32 %v1297_v25, %v1289_v20 }
 0x21e   : > { %v1316_v36 = vadd.f32 %v1315_v26, %v1291_v11  ;;  %v1293_v37 = vmul.f32 %v1279_v34, %v1253_v30  ;;  %v1295_v38 = vmul.f32 %v1279_v34, %v1255_v4  ;;  %v1254_v7 = vmax.f32 %v1238_v5, 0.0 }
 0x21f   : > { %v1256_v39 = vmax.f32 %v1240_v31, 0.0  ;;  %v1307_v8 = vadd.f32 %v1306_v32, %v1290_v28  ;;  %v1325_v40 = vadd.f32 %v1324_v33, %v1292_v29  ;;  %v1943_v56 = vmov 1966171168  }
 0x220   : > { %v1299_v41 = vadd.f32 %v1298_v35, %v1293_v37  ;;  %v1317_v42 = vadd.f32 %v1316_v36, %v1295_v38  ;;  %v1294_v43 = vmul.f32 %v1279_v34, %v1254_v7  ;;  %v1346_v57 = vunpack.c.l.s4 %v1943_v56 }
 0x221   : > { %v1296_v44 = vmul.f32 %v1279_v34, %v1256_v39  ;;  %v1334_v14 = vstv %s1333_s19 }
 0x222   : > { %v1300_v45 = vrot.slane %v1299_v41, 4  ;;  %v1318_v46 = vrot.slane %v1317_v42, 4  ;;  %v1308_v47 = vadd.f32 %v1307_v8, %v1294_v43  ;;  %v1347_v10 = vunpack.c.0.s8 %v1346_v57 }
 0x223   : > { %v1326_v48 = vadd.f32 %v1325_v40, %v1296_v44 }
 0x224   : > { %v1301_v27 = vadd.f32 %v1300_v45, %v1299_v41  ;;  %v1319_v49 = vadd.f32 %v1318_v46, %v1317_v42  ;;  %v1309_v50 = vrot.slane %v1308_v47, 4  ;;  %v1350_v17 = vsub.s32 %v1347_v10, %v2156_v1 }
 0x225   : > { %v1327_v51 = vrot.slane %v1326_v48, 4 }
 0x226   : > { %v1302_v52 = vrot.slane %v1301_v27, 2  ;;  %v1320_v53 = vrot.slane %v1319_v49, 2  ;;  %v1310_v54 = vadd.f32 %v1309_v50, %v1308_v47 }
 0x227   : > { %v1328_v55 = vadd.f32 %v1327_v51, %v1326_v48 }
 0x228   : > { %v1303_v58 = vadd.f32 %v1302_v52, %v1301_v27  ;;  %v1321_v59 = vadd.f32 %v1320_v53, %v1319_v49  ;;  %v1311_v60 = vrot.slane %v1310_v54, 2 }
 0x229   : > { %v1329_v61 = vrot.slane %v1328_v55, 2 }
 0x22a   : > { %v1304_v62 = vrot.slane %v1303_v58, 1  ;;  %v1322_v63 = vrot.slane %v1321_v59, 1  ;;  %v1312_v6 = vadd.f32 %v1311_v60, %v1310_v54 }
 0x22b   : > { %v1330_v9 = vadd.f32 %v1329_v61, %v1328_v55 }
 0x22c   : > { %v1305_v12 = vadd.f32 %v1304_v62, %v1303_v58  ;;  %v1323_v13 = vadd.f32 %v1322_v63, %v1321_v59  ;;  %v1313_v2 = vrot.slane %v1312_v6, 1 }
 0x22d   : > { %v1331_v3 = vrot.slane %v1330_v9, 1 }
 0x22e   : > { %v1314_v15 = vadd.f32 %v1313_v2, %v1312_v6  ;;  %v1335_v18 = vadd.f32 %v1334_v14, %v1305_v12  ;;  %v1337_v19 = vadd.f32 %v1334_v14, %v1323_v13 }
 0x22f   : > { %v1332_v16 = vadd.f32 %v1331_v3, %v1330_v9 }
 0x230   : > { %v1336_v20 = vadd.f32 %v1334_v14, %v1314_v15 }
 0x231   : > { %v1338_v11 = vadd.f32 %v1334_v14, %v1332_v16 }
 0x232   : > { %v1343_v21 = vcombine.low %v1335_v18, %v1336_v20 }
 0x233   : > { %v1344_v22 = vcombine.low %v1337_v19, %v1338_v11 }
 0x234   : > { %v1351_v23 = vrot.slane %v1343_v21, %v1350_v17 }
 0x235   : > { %v1358_v24 = vrot.slane %v1344_v22, %v1350_v17 }
 0x237   : > { %v1359_v25 = vcombine.low %v1351_v23, %v1358_v24 }
 0x239   : > { %v1366_v26 = vrot.slane %v1359_v25, %v1350_v17 }
 0x23b   : > { %1372 = vst.msk [vmem:[%s374_s28] sm:$0xf] %vm1370_vm3, %v1366_v26 }
 0x23c   : > { %1874 = shalt.err (!%p1871_p9)
}
 0x23d   : > { %s1875_s17 = scalar_lea.hbm %s1386_s4, 64  ;;  %s1879_s14 = scalar_lea.hbm %s2561_s8, 128 }
 0x23e   : > { %p1876_p1 = scmp.ne.s32.totalorder %s1386_s4, %s1875_s17  ;;  %p1880_p7 = scmp.lt.s32.totalorder %s1386_s4, %s2561_s8 }
 0x23f   : > { %p1881_p11 = scmp.lt.s32.totalorder %s1879_s14, %s1875_s17 }
 0x240   : > { %p1877_p4 = pnand %p1876_p1, %p2585_p12 }
 0x241   : > { %p1882_p8 = por %p1881_p11, %p1880_p7 }
 0x242   : > { %p1878_p6 = pneg %p1877_p4 }
 0x244   : > { %p1883_p3 = pnand %p1882_p8, %p1878_p6 }
 0x246   : > { %1886 = shalt.err (!%p1883_p3)
}
 0x247   : > { %1717 = dma.vmem_to_hbm [thread:$0]  (%p2585_p12), %s1389_s11, 64, %s1386_s4, %s1374_s15  }
 0x248 PF: > { %s1400_s26 = sand.u32 1, %s1921_s29   ;;  %p2586_p10 = scmp.ne.s32.totalorder %s2572_s13, 0 }
 0x249   : > { %p2587_p2 = scmp.ge.s32.totalorder %s1933_s10, 2  ;;  %s1401_s19 = scalar_lea.sflag [#allocation5], %s1400_s26 }
 0x24b   : > { %p1731_p13 = pnand %p2587_p2, %p2586_p10 }
 0x24d   : > { %p1732_p0 = pneg %p1731_p13 }
 0x24f   : > { %1916 = dma.done.wait (%p1732_p0), %s1401_s19, 64  }
 0x250   : > { %1918 = vsyncadd (%p1732_p0), %s1401_s19, 4294967232  ;;  %s2588_s10 = sld [smem:[#allocation15_spill]]  ;;  %s2591_s29 = smov %s1925_s30 }
 0x251   : > { %s2589_s24 = sld [smem:[#allocation14_spill]] }
 0x252   : > { %s2590_s9 = sld [smem:[#allocation16_spill]] }
 0x256   : > { %p25_p5 = scmp.ge.s32.totalorder %s2588_s10, 4  }
 0x257   : > { %s2592_s30 = smov %s2589_s24 }
 0x258   :  { %27 = sbr.rel (!%p25_p5) target bundleno = 10 (0xa), region = 114 }
 0x25d   :  { %1406 = vsyncpa [#allocation4], 1 }
 0x25e   :  { %1408 = vsyncpa [#allocation4 + $0x1], 1 }
 0x25f   :  { %1409 = vsyncpa [#allocation7], 1 }
 0x260   :  { %1411 = vsyncpa [#allocation7 + $0x1], 1 }
 0x261   :  { %1412 = vsyncpa [#allocation5], 1 }
 0x262   :  { %1414 = vsyncpa [#allocation5 + $0x1], 1 }

</bundles_post_ra>
